<compile_context>
chip_gen: v7x
topology: tpu7x:2x2x1
jax: 0.10.0
libtpu: 0.0.40
codegen_flags: <defaults>
</compile_context>

<pallas_src>
import jax
import jax.numpy as jnp
from jax import lax
from jax.experimental import pallas as pl
from jax.experimental.pallas import tpu as pltpu  # noqa: F401  (TPU backend)

# ---------------- problem sizes (small, consistent with the module) ----------
BC = 2          # batch
NODES = 8       # graph nodes
FEAT = 16       # input_dim (seq_len * feature)
HIDDEN = 32     # fixed in the module
OUT = 8         # output_dim
LN_EPS = 1e-5   # nn.LayerNorm default
LEAKY = 0.1     # nn.LeakyReLU(0.1)
ROWS = BC * NODES            # 16 rows of the flattened problem
NEG_BIG = -1e30              # additive mask for cross-graph attention entries

# ------------- packed constant buffer layout (rows, width = HIDDEN = 32) -----
R_W1 = 0                      # w1:        rows [0, 16),  cols [0, 32)
R_W2 = R_W1 + FEAT            # w2:        rows [16, 48), cols [0, 8)
R_B1 = R_W2 + HIDDEN          # b1:        row 48,        cols [0, 32)
R_GAMMA = R_B1 + 1            # gamma:     row 49
R_BETA = R_GAMMA + 1          # beta:      row 50
R_B2 = R_BETA + 1             # b2:        row 51,        cols [0, 8)
R_MMUL = R_B2 + 1             # mult mask: rows [52, 68), cols [0, 16)
R_MADD = R_MMUL + ROWS        # add  mask: rows [68, 84), cols [0, 16)
PK_ROWS = 88                  # padded to a multiple of 8 sublanes
PK_COLS = HIDDEN              # 32


def gat_kernel(h_ref, pk_ref, out_ref):
    # h_ref: [ROWS, FEAT]    pk_ref: [PK_ROWS, PK_COLS]    out_ref: [ROWS, OUT]
    h = h_ref[...]

    w1 = pk_ref[R_W1:R_W1 + FEAT, :HIDDEN]            # [16, 32]
    w2 = pk_ref[R_W2:R_W2 + HIDDEN, :OUT]             # [32, 8]
    b1 = pk_ref[R_B1:R_B1 + 1, :HIDDEN]               # [1, 32]
    gamma = pk_ref[R_GAMMA:R_GAMMA + 1, :HIDDEN]       # [1, 32]
    beta = pk_ref[R_BETA:R_BETA + 1, :HIDDEN]          # [1, 32]
    b2 = pk_ref[R_B2:R_B2 + 1, :OUT]                   # [1, 8]
    mask_mul = pk_ref[R_MMUL:R_MMUL + ROWS, :ROWS]     # [16, 16] block-diag adj
    mask_add = pk_ref[R_MADD:R_MADD + ROWS, :ROWS]     # [16, 16] 0 / -1e30

    # --- MLP: Linear -> LayerNorm -> ReLU -> Linear (all BC*NODES rows) ------
    u = jnp.dot(h, w1, preferred_element_type=jnp.float32) + b1
    mean = jnp.mean(u, axis=-1, keepdims=True)
    mean_sq = jnp.mean(u * u, axis=-1, keepdims=True)   # independent reductions
    var = mean_sq - mean * mean                          # E[u^2] - mean^2
    u = (u - mean) * lax.rsqrt(var + LN_EPS)
    u = u * gamma + beta                                 # LayerNorm affine
    u = jnp.maximum(u, 0.0)                              # ReLU
    z = jnp.dot(u, w2, preferred_element_type=jnp.float32) + b2   # [16, 8]

    # --- batched attention over both graphs in one shot ----------------------
    # z z^T contracting last-dim vs last-dim (no explicit transpose via XLU).
    s = lax.dot_general(z, z,
                        dimension_numbers=(((1,), (1,)), ((), ())),
                        preferred_element_type=jnp.float32)        # [16, 16]
    s = jnp.where(s >= 0.0, s, LEAKY * s)                          # LeakyReLU(0.1)
    # Within-graph non-edges -> 0 (multiplicative, matches reference semantics:
    # they still contribute exp(-rowmax) to the denominator).  Cross-graph
    # entries -> -1e30 (additive) so they drop out of the per-graph softmax.
    a = s * mask_mul + mask_add

    # Row softmax (exact divide -- EUP has slack, keeps rows summing to 1).
    a = a - jnp.max(a, axis=-1, keepdims=True)
    e = jnp.exp(a)
    a = e / jnp.sum(e, axis=-1, keepdims=True)

    # Aggregate and one contiguous store.
    # TODO(synk): if this feeds further kernels, pack OUT=8 into a lane-dense
    # (>=128) output slab instead of a [16, 8] masked store.
    out_ref[...] = jnp.dot(a, z, preferred_element_type=jnp.float32)


def pack_constants(w1, b1, gamma, beta, w2, b2, mask):
    """Build the single [PK_ROWS, PK_COLS] constant buffer ONCE (outside jit)."""
    def pad_cols(x):
        x = jnp.asarray(x, jnp.float32)
        return jnp.pad(x, ((0, 0), (0, PK_COLS - x.shape[1])))

    block_sel = jnp.kron(jnp.eye(BC, dtype=jnp.float32),
                         jnp.ones((NODES, NODES), jnp.float32))    # [16, 16]
    mask_mul = jnp.kron(jnp.eye(BC, dtype=jnp.float32), mask)      # block-diag adj
    mask_add = (1.0 - block_sel) * NEG_BIG                         # 0 / -1e30

    parts = [
        pad_cols(w1),                       # rows  0..15
        pad_cols(w2),                       # rows 16..47
        pad_cols(b1.reshape(1, HIDDEN)),    # row  48
        pad_cols(gamma.reshape(1, HIDDEN)), # row  49
        pad_cols(beta.reshape(1, HIDDEN)),  # row  50
        pad_cols(b2.reshape(1, OUT)),       # row  51
        pad_cols(mask_mul),                 # rows 52..67
        pad_cols(mask_add),                 # rows 68..83
    ]
    packed = jnp.concatenate(parts, axis=0)
    packed = jnp.pad(packed, ((0, PK_ROWS - packed.shape[0]), (0, 0)))
    return packed


@jax.jit
def gat_forward(h, packed):
    bc, n, f = h.shape
    h2d = h.reshape(bc * n, f)
    # Single kernel invocation; whole arrays live in VMEM (full-array blocks).
    out = pl.pallas_call(
        gat_kernel,
        out_shape=jax.ShapeDtypeStruct((bc * n, OUT), jnp.float32),
    )(h2d, packed)
    return out.reshape(bc, n, OUT)


def reference_forward(h, w1, b1, gamma, beta, w2, b2, mask):
    """Pure-JAX reference of the PyTorch forward for a correctness check."""
    bc = h.shape[0]
    x = h.reshape(bc * NODES, FEAT)
    u = x @ w1 + b1
    mean = jnp.mean(u, axis=-1, keepdims=True)
    var = jnp.mean((u - mean) ** 2, axis=-1, keepdims=True)
    u = (u - mean) / jnp.sqrt(var + LN_EPS) * gamma + beta
    u = jnp.maximum(u, 0.0)
    z = (u @ w2 + b2).reshape(bc, NODES, OUT)
    a = jnp.einsum("bij,bkj->bik", z, z)
    a = jnp.where(a >= 0.0, a, LEAKY * a) * mask[None]
    a = jax.nn.softmax(a, axis=2)
    return jnp.einsum("bij,bjd->bid", a, z)


if __name__ == "__main__":
    key = jax.random.PRNGKey(0)
    k_h, k_w1, k_b1, k_w2, k_b2, k_aw = jax.random.split(key, 6)

    # Deterministic parameters (shapes from GATLayer.__init__).
    w1 = (jax.random.normal(k_w1, (FEAT, HIDDEN), jnp.float32)
          * (1.0 / jnp.sqrt(FEAT)))
    b1 = jax.random.normal(k_b1, (1, HIDDEN), jnp.float32) * 0.01
    gamma = jnp.ones((1, HIDDEN), jnp.float32)         # LayerNorm weight
    beta = jnp.zeros((1, HIDDEN), jnp.float32)         # LayerNorm bias
    w2 = (jax.random.normal(k_w2, (HIDDEN, OUT), jnp.float32)
          * (1.0 / jnp.sqrt(HIDDEN)))
    b2 = jax.random.normal(k_b2, (1, OUT), jnp.float32) * 0.01
    # atten_W exists in the module but is unused by forward(); kept for parity.
    atten_W = jax.random.normal(k_aw, (2 * OUT, 1), jnp.float32) * 1.414
    # TODO(synk): edge_attention_concatenate (uses atten_W) is dead code in
    # forward(); not implemented in the kernel.

    # Deterministic adjacency (ring + self loops) -> dense mask [NODES, NODES].
    rows = jnp.concatenate([jnp.arange(NODES), jnp.arange(NODES), jnp.arange(NODES)])
    cols = jnp.concatenate([jnp.arange(NODES),
                            (jnp.arange(NODES) + 1) % NODES,
                            (jnp.arange(NODES) - 1) % NODES])
    mask = jnp.zeros((NODES, NODES), jnp.float32).at[rows, cols].set(1.0)

    h = jax.random.normal(k_h, (BC, NODES, FEAT), jnp.float32)

    # Model constants packed ONCE, outside the per-call path.
    packed = jax.block_until_ready(pack_constants(w1, b1, gamma, beta, w2, b2, mask))

    out = gat_forward(h, packed)
    out = jax.block_until_ready(out)

    ref = reference_forward(h, w1, b1, gamma, beta, w2, b2, mask)
    assert out.shape == (BC, NODES, OUT)
    assert jnp.allclose(out, ref, atol=1e-4, rtol=1e-4), "mismatch vs reference"

    print("KERNEL_OK")
</pallas_src>

<mosaic_0001>
module attributes {stable_mosaic.version = 11 : i64} {
  func.func @gat_kernel(%arg0: memref<16x16xf32, #tpu.memory_space<vmem>>, %arg1: memref<88x32xf32, #tpu.memory_space<vmem>>, %arg2: memref<16x8xf32, #tpu.memory_space<vmem>>) attributes {dimension_semantics = [], scalar_prefetch = 0 : i64, scratch_operands = 0 : i64, tpu.core_type = #tpu.core_type<tc>} {
    %c0 = arith.constant 0 : index
    %c0_0 = arith.constant 0 : index
    %0 = vector.load %arg0[%c0, %c0_0] : memref<16x16xf32, #tpu.memory_space<vmem>>, vector<16x16xf32>
    %c0_1 = arith.constant 0 : index
    %c0_2 = arith.constant 0 : index
    %1 = vector.load %arg1[%c0_1, %c0_2] : memref<88x32xf32, #tpu.memory_space<vmem>>, vector<16x32xf32>
    %c16 = arith.constant 16 : index
    %c0_3 = arith.constant 0 : index
    %2 = vector.load %arg1[%c16, %c0_3] : memref<88x32xf32, #tpu.memory_space<vmem>>, vector<32x8xf32>
    %c48 = arith.constant 48 : index
    %c0_4 = arith.constant 0 : index
    %3 = vector.load %arg1[%c48, %c0_4] : memref<88x32xf32, #tpu.memory_space<vmem>>, vector<1x32xf32>
    %c49 = arith.constant 49 : index
    %c0_5 = arith.constant 0 : index
    %4 = vector.load %arg1[%c49, %c0_5] : memref<88x32xf32, #tpu.memory_space<vmem>>, vector<1x32xf32>
    %c50 = arith.constant 50 : index
    %c0_6 = arith.constant 0 : index
    %5 = vector.load %arg1[%c50, %c0_6] : memref<88x32xf32, #tpu.memory_space<vmem>>, vector<1x32xf32>
    %c51 = arith.constant 51 : index
    %c0_7 = arith.constant 0 : index
    %6 = vector.load %arg1[%c51, %c0_7] : memref<88x32xf32, #tpu.memory_space<vmem>>, vector<1x8xf32>
    %c52 = arith.constant 52 : index
    %c0_8 = arith.constant 0 : index
    %7 = vector.load %arg1[%c52, %c0_8] : memref<88x32xf32, #tpu.memory_space<vmem>>, vector<16x16xf32>
    %c68 = arith.constant 68 : index
    %c0_9 = arith.constant 0 : index
    %8 = vector.load %arg1[%c68, %c0_9] : memref<88x32xf32, #tpu.memory_space<vmem>>, vector<16x16xf32>
    %cst = arith.constant dense<0.000000e+00> : vector<16x32xf32>
    %9 = tpu.matmul %0, %1, %cst {dimension_numbers = #tpu.dot_dimension_numbers<[1], [0], [0], [1], [0, 0, 1, 1], [], []>} : vector<16x16xf32>, vector<16x32xf32>, vector<16x32xf32> -> vector<16x32xf32>
    %10 = vector.broadcast %3 : vector<1x32xf32> to vector<16x32xf32>
    %11 = arith.addf %9, %10 : vector<16x32xf32>
    %cst_10 = arith.constant dense<0.000000e+00> : vector<16xf32>
    %12 = vector.multi_reduction <add>, %11, %cst_10 [1] : vector<16x32xf32> to vector<16xf32>
    %13 = vector.shape_cast %12 : vector<16xf32> to vector<16x1xf32>
    %cst_11 = arith.constant 3.200000e+01 : f32
    %14 = vector.broadcast %cst_11 : f32 to vector<16x1xf32>
    %15 = arith.divf %13, %14 : vector<16x1xf32>
    %16 = arith.mulf %11, %11 : vector<16x32xf32>
    %cst_12 = arith.constant dense<0.000000e+00> : vector<16xf32>
    %17 = vector.multi_reduction <add>, %16, %cst_12 [1] : vector<16x32xf32> to vector<16xf32>
    %18 = vector.shape_cast %17 : vector<16xf32> to vector<16x1xf32>
    %cst_13 = arith.constant 3.200000e+01 : f32
    %19 = vector.broadcast %cst_13 : f32 to vector<16x1xf32>
    %20 = arith.divf %18, %19 : vector<16x1xf32>
    %21 = arith.mulf %15, %15 : vector<16x1xf32>
    %22 = arith.subf %20, %21 : vector<16x1xf32>
    %23 = vector.broadcast %15 : vector<16x1xf32> to vector<16x32xf32>
    %24 = arith.subf %11, %23 : vector<16x32xf32>
    %cst_14 = arith.constant 9.99999974E-6 : f32
    %25 = vector.broadcast %cst_14 : f32 to vector<16x1xf32>
    %26 = arith.addf %22, %25 : vector<16x1xf32>
    %27 = math.rsqrt %26 : vector<16x1xf32>
    %28 = vector.broadcast %27 : vector<16x1xf32> to vector<16x32xf32>
    %29 = arith.mulf %24, %28 : vector<16x32xf32>
    %30 = vector.broadcast %4 : vector<1x32xf32> to vector<16x32xf32>
    %31 = arith.mulf %29, %30 : vector<16x32xf32>
    %32 = vector.broadcast %5 : vector<1x32xf32> to vector<16x32xf32>
    %33 = arith.addf %31, %32 : vector<16x32xf32>
    %cst_15 = arith.constant 0.000000e+00 : f32
    %34 = vector.broadcast %cst_15 : f32 to vector<16x32xf32>
    %35 = arith.maximumf %33, %34 : vector<16x32xf32>
    %cst_16 = arith.constant dense<0.000000e+00> : vector<16x8xf32>
    %36 = tpu.matmul %35, %2, %cst_16 {dimension_numbers = #tpu.dot_dimension_numbers<[1], [0], [0], [1], [0, 0, 1, 1], [], []>} : vector<16x32xf32>, vector<32x8xf32>, vector<16x8xf32> -> vector<16x8xf32>
    %37 = vector.broadcast %6 : vector<1x8xf32> to vector<16x8xf32>
    %38 = arith.addf %36, %37 : vector<16x8xf32>
    %cst_17 = arith.constant dense<0.000000e+00> : vector<16x16xf32>
    %39 = tpu.matmul %38, %38, %cst_17 {dimension_numbers = #tpu.dot_dimension_numbers<[1], [1], [0], [0], [0, 0, 1, 0], [], []>} : vector<16x8xf32>, vector<16x8xf32>, vector<16x16xf32> -> vector<16x16xf32>
    %cst_18 = arith.constant 0.000000e+00 : f32
    %40 = vector.broadcast %cst_18 : f32 to vector<16x16xf32>
    %41 = arith.cmpf oge, %39, %40 : vector<16x16xf32>
    %cst_19 = arith.constant 1.000000e-01 : f32
    %42 = vector.broadcast %cst_19 : f32 to vector<16x16xf32>
    %43 = arith.mulf %42, %39 : vector<16x16xf32>
    %44 = arith.select %41, %39, %43 : vector<16x16xi1>, vector<16x16xf32>
    %45 = arith.mulf %44, %7 : vector<16x16xf32>
    %46 = arith.addf %45, %8 : vector<16x16xf32>
    %cst_20 = arith.constant dense<0xFF800000> : vector<16xf32>
    %47 = vector.multi_reduction <maximumf>, %46, %cst_20 [1] : vector<16x16xf32> to vector<16xf32>
    %48 = vector.shape_cast %47 : vector<16xf32> to vector<16x1xf32>
    %49 = vector.broadcast %48 : vector<16x1xf32> to vector<16x16xf32>
    %50 = arith.subf %46, %49 : vector<16x16xf32>
    %51 = math.exp %50 : vector<16x16xf32>
    %cst_21 = arith.constant dense<0.000000e+00> : vector<16xf32>
    %52 = vector.multi_reduction <add>, %51, %cst_21 [1] : vector<16x16xf32> to vector<16xf32>
    %53 = vector.shape_cast %52 : vector<16xf32> to vector<16x1xf32>
    %54 = vector.broadcast %53 : vector<16x1xf32> to vector<16x16xf32>
    %55 = arith.divf %51, %54 : vector<16x16xf32>
    %cst_22 = arith.constant dense<0.000000e+00> : vector<16x8xf32>
    %56 = tpu.matmul %55, %38, %cst_22 {dimension_numbers = #tpu.dot_dimension_numbers<[1], [0], [0], [1], [0, 0, 1, 1], [], []>} : vector<16x16xf32>, vector<16x8xf32>, vector<16x8xf32> -> vector<16x8xf32>
    %c0_23 = arith.constant 0 : index
    %c0_24 = arith.constant 0 : index
    %57 = vector.load %arg2[%c0_23, %c0_24] : memref<16x8xf32, #tpu.memory_space<vmem>>, vector<16x8xf32>
    tpu.vector_store %arg2[%c0_23, %c0_24], %56 {strides = array<i32>} : memref<16x8xf32, #tpu.memory_space<vmem>>, vector<16x8xf32>,
    return
  }
}

</mosaic_0001>

<bundles_post_ra>
// kernel: gat_forward.1
= control target key start
LH: loop header
LB: loop body
LE: loop exit
PB: predicated region body
PF: predicated region fallthrough
CT: control target
= control target key end

     0   :  { %vm32_vm0 = vcmask 130048   ;;  %s681_s0 = inlined_call_operand.vmem [shape: f32[16,16], index: 0, kind: input, shape index: {}]   ;;  %s682_s1 = inlined_call_operand.vmem [shape: f32[88,32], index: 1, kind: input, shape index: {}]   ;;  %s683_s2 = inlined_call_operand.hbm [shape: f32[16,8], index: 2, kind: output, shape index: {}]  }
   0x1   :  { %v14_v0 = vld [vmem:[%s682_s1] sm:$0xff]  ;;  %v15_v1 = vld [vmem:[%s682_s1 + $0x8] sm:$0xff] }
   0x2   :  { %v12_v2 = vld [vmem:[%s681_s0] sm:$0xff]  ;;  %v522_v3 = vpack.c.bf16 %v15_v1, %v14_v0 }
   0x3   :  { %494 = vmatprep.mubr.msk.f32.mxu0 %vm32_vm0, %v12_v2 }
   0x4   :  { %7 = vsyncpa [#allocation3], 0  ;;  %523 = vmatprep.subr.bf16.mxu0 %v522_v3  ;;  %v13_v4 = vld [vmem:[%s681_s0 + $0x8] sm:$0xff]  ;;  %v458_v5 = vld [vmem:[%s682_s1 + $0x30] ss:$0 sm:$0xff]  ;;  %vm114_vm1 = vcmask 261120  }
   0x5   :  { %525 = vmatpush3.bf16.msra.mxu0 %v522_v3  ;;  %v16_v16 = vld [vmem:[%s682_s1 + $0x10] sm:$0xff]  ;;  %v17_v17 = vld [vmem:[%s682_s1 + $0x18] sm:$0xff]  ;;  %v18_v18 = vld [vmem:[%s682_s1 + $0x20] sm:$0xff]  ;;  %vm245_vm2 = vcmask 64512  }
   0x6   :  { %v526_v19 = vpack.c.bf16 %v17_v17, %v16_v16  ;;  %v19_v20 = vld [vmem:[%s682_s1 + $0x28] sm:$0xff]  ;;  %v461_v38 = vld [vmem:[%s682_s1 + $0x31] ss:$0 sm:$0xff]  ;;  %v462_v40 = vld [vmem:[%s682_s1 + $0x32] ss:$0 sm:$0xff] }
   0x7   :  { %v530_v21 = vpack.c.bf16 %v19_v20, %v18_v18  ;;  %v463_v50 = vld [vmem:[%s682_s1 + $0x33] ss:$0 sm:$0xff]  ;;  %vm535_vm3 = vmpackc.low %vm245_vm2, %vm245_vm2  ;;  %v25_v59 = vld [vmem:[%s682_s1 + $0x3c] sm:$0xff] }
   0x8   :  { %495 = vmatmul.mubr.msk.f32.vlgmr.msra.gmra.mrb[0].mxu0 %vm32_vm0, %v13_v4  ;;  %527 = vmatprep.subr.bf16.mxu1 %v526_v19  ;;  %v24_v60 = vld [vmem:[%s682_s1 + $0x34] sm:$0xff]  ;;  %v27_v63 = vld [vmem:[%s682_s1 + $0x4c] sm:$0xff]  ;;  %v26_v2 = vld [vmem:[%s682_s1 + $0x44] sm:$0xff]  ;;  %s583_s1 = smov [#allocation2]  }
   0x9   :  { %529 = vmatpush3.bf16.msra.mxu1 %v526_v19  ;;  %s447_s12 = sshll.u32 %s583_s1, 4  ;;  %s448_s12 = int_to_ptr.vmem [resolvable:$true] %s447_s12 }
   0xa   :  { %531 = vmatprep.subr.bf16.mxu1 %v530_v21  ;;  %s559_s13 = scalar_lea.vmem %s448_s12, 256  ;;  %p564_p1 = scmp.lt.s32.totalorder %s448_s12, %s448_s12 }
   0xb   :  { %p560_p0 = scmp.ne.s32.totalorder %s448_s12, %s559_s13  ;;  %p565_p2 = scmp.lt.s32.totalorder %s559_s13, %s559_s13 }
   0xd   :  { %533 = vmatpush3.bf16.msra.mxu1 %v530_v21  ;;  %p566_p3 = por %p565_p2, %p564_p1 }
   0xf   :  { %p567_p4 = pnand %p566_p3, %p560_p0 }
  0xdb   :  { %v496_v6 = vpop.f32.mrb[0].mxu0 }
  0xdc   :  { %v105_v7 = vpop.f32.mrb[1].mxu0  ;;  %v111_v8 = vadd.f32 %v496_v6, %v458_v5 }
  0xdd   :  { %v106_v9 = vadd.f32 %v458_v5, %v105_v7 }
  0xde   :  { %v125_v13 = vmul.f32 %v111_v8, %v111_v8  ;;  %v118_v14 = vsel %vm114_vm1, %v111_v8, 0.0 }
  0xdf   :  { %v115_v10 = vsel %vm114_vm1, %v106_v9, 0.0  ;;  %v124_v11 = vmul.f32 %v106_v9, %v106_v9 }
  0xe0   :  { %116 = vadd.xlane.f32.xlu0 %v115_v10  ;;  %v129_v15 = vsel %vm114_vm1, %v125_v13, 0.0 }
  0xe1   :  { %v126_v12 = vsel %vm114_vm1, %v124_v11, 0.0 }
  0xe2   :  { %127 = vadd.xlane.f32.xlu1 %v126_v12 }
  0xe4   :  { %119 = vadd.xlane.f32.xlu0 %v118_v14 }
  0xe6   :  { %130 = vadd.xlane.f32.xlu1 %v129_v15 }
 0x16d   :  { %v117_v22 = vpop.xlane.xlu0 %116 }
 0x16e   :  { %v122_v23 = vmul.f32 0.03125, %v117_v22 }
 0x16f   :  { %v128_v24 = vpop.xlane.xlu1 %127 }
 0x170   :  { %v134_v25 = vmul.f32 %v122_v23, %v122_v23  ;;  %v132_v26 = vmul.f32 0.03125, %v128_v24  ;;  %v138_v36 = vsub.f32 %v106_v9, %v122_v23 }
 0x171   :  { %v120_v27 = vpop.xlane.xlu0 %119 }
 0x172   :  { %v136_v28 = vsub.f32 %v132_v26, %v134_v25  ;;  %v123_v29 = vmul.f32 0.03125, %v120_v27 }
 0x173   :  { %v131_v30 = vpop.xlane.xlu1 %130 }
 0x174   :  { %v140_v31 = vadd.f32 1e-05, %v136_v28  ;;  %v135_v32 = vmul.f32 %v123_v29, %v123_v29  ;;  %v133_v33 = vmul.f32 0.03125, %v131_v30  ;;  %v139_v41 = vsub.f32 %v111_v8, %v123_v29 }
 0x176   :  { %547 = vrsqrt.f32 %v140_v31  ;;  %v137_v34 = vsub.f32 %v133_v33, %v135_v32 }
 0x178   :  { %v141_v35 = vadd.f32 1e-05, %v137_v34 }
 0x17a   :  { %549 = vrsqrt.f32 %v141_v35 }
 0x180   :  { %v548_v37 = vpop.eup %547 }
 0x181   :  { %v144_v39 = vmul.f32 %v548_v37, %v138_v36 }
 0x183   :  { %v150_v42 = vmul.f32 %v461_v38, %v144_v39 }
 0x184   :  { %v550_v43 = vpop.eup %549 }
 0x185   :  { %v145_v44 = vmul.f32 %v550_v43, %v139_v41  ;;  %v156_v45 = vadd.f32 %v462_v40, %v150_v42 }
 0x187   :  { %v151_v46 = vmul.f32 %v461_v38, %v145_v44  ;;  %v158_v47 = vmax.f32 %v156_v45, 0.0 }
 0x189   :  { %v157_v48 = vadd.f32 %v462_v40, %v151_v46  ;;  %505 = vmatprep.mubr.msk.f32.mxu1 %vm114_vm1, %v158_v47 }
 0x18b   :  { %v159_v49 = vmax.f32 %v157_v48, 0.0 }
 0x18d   :  { %506 = vmatmul.mubr.msk.f32.vlgmr.msra.gmra.mrb[0].mxu1 %vm114_vm1, %v159_v49 }
 0x260   :  { %v507_v51 = vpop.f32.mrb[0].mxu1 }
 0x261   :  { %v242_v52 = vadd.f32 %v507_v51, %v463_v50  ;;  %v236_v53 = vpop.f32.mrb[1].mxu1 }
 0x262   :  { %v237_v54 = vadd.f32 %v463_v50, %v236_v53 }
 0x264   :  { %v534_v55 = vpack.c.bf16 %v242_v52, %v237_v54  ;;  %512 = vmatprep.mubr.msk.f32.mxu0 %vm245_vm2, %v237_v54 }
 0x266   :  { %536 = vmatprep.subr.msk.bf16.mxu0 %vm535_vm3, %v534_v55  ;;  %541 = vmatprep.subr.bf16.mxu1 %v534_v55 }
 0x267   :  { %539 = vmatpush3.bf16.xpose.msk.msra.mxu0 %vm535_vm3, %v534_v55  ;;  %543 = vmatpush3.bf16.msra.mxu1 %v534_v55 }
 0x26e   :  { %513 = vmatmul.mubr.msk.f32.vlgmr.msra.gmra.mrb[2].mxu0 %vm245_vm2, %v242_v52 }
 0x341   :  { %v514_v56 = vpop.f32.mrb[2].mxu0 }
 0x342   :  { %vm328_vm4 = vcmp.ge.f32.partialorder %v514_v56, 0.0  ;;  %v330_v57 = vmul.f32 0.1, %v514_v56  ;;  %v318_v58 = vpop.f32.mrb[3].mxu0 }
 0x343   :  { %vm327_vm5 = vcmp.ge.f32.partialorder %v318_v58, 0.0  ;;  %v329_v61 = vmul.f32 0.1, %v318_v58 }
 0x344   :  { %v332_v62 = vsel %vm328_vm4, %v514_v56, %v330_v57 }
 0x345   :  { %v331_v0 = vsel %vm327_vm5, %v318_v58, %v329_v61  ;;  %v334_v1 = vmul.f32 %v332_v62, %v25_v59 }
 0x346   :  { %v333_v3 = vmul.f32 %v331_v0, %v24_v60 }
 0x347   :  { %v336_v4 = vadd.f32 %v334_v1, %v27_v63 }
 0x348   :  { %v335_v5 = vadd.f32 %v333_v3, %v26_v2 }
 0x349   :  { %v340_v6 = vsel %vm32_vm0, %v336_v4, -inf }
 0x34a   :  { %341 = vmax.xlane.f32.xlu1 %v340_v6  ;;  %v337_v7 = vsel %vm32_vm0, %v335_v5, -inf }
 0x34b   :  { %338 = vmax.xlane.f32.xlu0 %v337_v7 }
 0x3d7   :  { %v342_v8 = vpop.xlane.xlu1 %341 }
 0x3d8   :  { %v344_v9 = vsub.f32 %v336_v4, %v342_v8  ;;  %v339_v10 = vpop.xlane.xlu0 %338 }
 0x3d9   :  { %v343_v11 = vsub.f32 %v335_v5, %v339_v10 }
 0x3da   :  { %v347_v12 = vmul.f32 1.442695, %v344_v9 }
 0x3db   :  { %v345_v13 = vmul.f32 1.442695, %v343_v11 }
 0x3dc   :  { %551 = vpow2.f32 %v347_v12 }
 0x3dd   :  { %553 = vpow2.f32 %v345_v13 }
 0x3e6   :  { %v552_v14 = vpop.eup %551 }
 0x3e7   :  { %v554_v15 = vpop.eup %553  ;;  %v352_v16 = vsel %vm32_vm0, %v552_v14, 0.0 }
 0x3e8   :  { %353 = vadd.xlane.f32.xlu1 %v352_v16  ;;  %v349_v17 = vsel %vm32_vm0, %v554_v15, 0.0 }
 0x3e9   :  { %350 = vadd.xlane.f32.xlu0 %v349_v17 }
 0x475   :  { %v354_v18 = vpop.xlane.xlu1 %353 }
 0x476   :  { %555 = vrcp.f32 %v354_v18  ;;  %v351_v19 = vpop.xlane.xlu0 %350 }
 0x477   :  { %557 = vrcp.f32 %v351_v19 }
 0x480   :  { %v556_v20 = vpop.eup %555 }
 0x481   :  { %v558_v21 = vpop.eup %557  ;;  %v358_v23 = vmul.f32 %v556_v20, %v552_v14 }
 0x482   :  { %v356_v22 = vmul.f32 %v558_v21, %v554_v15 }
 0x484   :  { %519 = vmatprep.mubr.msk.f32.mxu1 %vm32_vm0, %v356_v22 }
 0x485   :  { %520 = vmatmul.mubr.msk.f32.vlgmr.msra.gmra.mrb[2].mxu1 %vm32_vm0, %v358_v23 }
 0x558   :  { %v521_v24 = vpop.f32.mrb[2].mxu1 }
 0x559   :  { %441 = vst.msk [vmem:[#allocation2 + $0x8] sm:$0xff] %vm245_vm2, %v521_v24  ;;  %v431_v25 = vpop.f32.mrb[3].mxu1 }
 0x55a   :  { %440 = vst.msk [vmem:[#allocation2] sm:$0xff] %vm245_vm2, %v431_v25 }
 0x55b   :  { %570 = shalt.err (!%p567_p4)
}
 0x55c   :  { %s571_s16 = scalar_lea.hbm %s683_s2, 256 }
 0x55d   :  { %p572_p5 = scmp.ne.s32.totalorder %s683_s2, %s571_s16  ;;  %p575_p6 = scmp.lt.u32.totalorder %s571_s16, %s683_s2 }
 0x55f   :  { %p577_p7 = pnand %p575_p6, %p572_p5 }
 0x561   :  { %580 = shalt.err (!%p577_p7)
}
 0x562   :  { %s584_s20 = smov 128   ;;  %s585_s21 = smov 8  }
 0x563   :  { %453 = dma.vmem_to_hbm [thread:$0]  %s448_s12, 256, %s683_s2, [#allocation3], %s584_s20, %s584_s20, %s585_s21  }
 0x564   :  { %581 = dma.done.wait [#allocation3], 256  }
 0x565   :  { %582 = vsyncadd [#allocation3], 4294967040 }
 0x566   :  { %457 = vsyncpa [#allocation3], 1 }

</bundles_post_ra>
